<compile_context>
chip_gen: v5e
topology: v5e:2x2
jax: 0.10.0
libtpu: 0.0.40
codegen_flags: <defaults>
</compile_context>

<pallas_src>
import functools

import jax
import jax.numpy as jnp
from jax.experimental import pallas as pl
from jax.experimental.pallas import tpu as pltpu

_EPS = 1e-5
_LANE = 128
_BLOCK_BUDGET = 4 * 1024 * 1024       # max bytes of one (nb, C, HWp) input block (path A)
_TILE_TARGET = 2 * 1024 * 1024        # target bytes of one (1, C, tk) tile (path B)


def _vmem_limit(block_bytes):
    # Generous limit: double-buffered in/out + f32 temps, capped below physical.
    return int(min(56 * 2**20, max(32 * 2**20, 8 * block_bytes + 8 * 2**20)))


# --------------------------------------------------------------------------
# Path A: whole-sample(s) resident, single fused pass.
# --------------------------------------------------------------------------
def _ln_fused_kernel(x_ref, scale_ref, bias_ref, o_ref, *, inv_count, hw_valid):
    # x_ref block: (nb, C, HWp); scale/bias blocks: (1, C, 1)
    x = x_ref[...].astype(jnp.float32)
    # Padded tail columns (if any) are zeros, so the raw sum is already exact.
    mean = jnp.sum(x, axis=(1, 2), keepdims=True) * inv_count        # (nb,1,1)
    xc = x - mean                                                    # reused below
    xc2 = xc * xc
    if hw_valid is not None:
        # Mask padded columns out of the variance accumulation.
        col = jax.lax.broadcasted_iota(jnp.int32, xc2.shape, 2)
        xc2 = jnp.where(col < hw_valid, xc2, 0.0)
    var = jnp.sum(xc2, axis=(1, 2), keepdims=True) * inv_count       # biased var
    inv = jax.lax.rsqrt(var + _EPS)                                  # (nb,1,1)
    # Fold the affine: single FMA over the already-resident xc.
    sp = inv * scale_ref[...].astype(jnp.float32)                    # (nb,C,1)
    b = bias_ref[...].astype(jnp.float32)                            # (1,C,1)
    o_ref[...] = (xc * sp + b).astype(o_ref.dtype)


# --------------------------------------------------------------------------
# Path B: tiled two-pass (stats, then normalize + affine) for large samples.
# --------------------------------------------------------------------------
def _stats_kernel(x_ref, s1_ref, s2_ref):
    t = pl.program_id(1)

    @pl.when(t == 0)
    def _():
        s1_ref[...] = jnp.zeros_like(s1_ref)
        s2_ref[...] = jnp.zeros_like(s2_ref)

    x = x_ref[...].astype(jnp.float32)        # (1, C, tk); padded cols are zero
    s1_ref[...] = s1_ref[...] + jnp.sum(x)
    s2_ref[...] = s2_ref[...] + jnp.sum(x * x)


def _apply_kernel(x_ref, sp_ref, bp_ref, o_ref):
    # out = x * s' + b'   with s' = inv*scale, b' = bias - mean*s'  (one FMA pass)
    x = x_ref[...].astype(jnp.float32)        # (1, C, tk)
    o_ref[...] = (x * sp_ref[...] + bp_ref[...]).astype(o_ref.dtype)


# --------------------------------------------------------------------------
# Wrapper
# --------------------------------------------------------------------------
def layer_norm_affine_2d(x, scale, bias, *, force_two_pass=False):
    """x: (N, C, H, W); scale, bias: (1, C, 1, 1). Returns (N, C, H, W)."""
    N, C, H, W = x.shape
    HW = H * W
    itemsize = jnp.dtype(x.dtype).itemsize

    hw_pad_lane = ((HW + _LANE - 1) // _LANE) * _LANE
    per_sample_bytes = C * hw_pad_lane * itemsize
    use_single_pass = (per_sample_bytes <= _BLOCK_BUDGET) and (not force_two_pass)

    if use_single_pass:
        # ---------------- Path A ----------------
        hw_pad = hw_pad_lane
        x2 = x.reshape(N, C, HW)
        if hw_pad != HW:
            x2 = jnp.pad(x2, ((0, 0), (0, 0), (0, hw_pad - HW)))

        # Pick nb: largest divisor of N that fits the budget, but keep >= 2
        # grid steps when N allows (megacore / v7x: 2 TensorCores per chip).
        divisors = [d for d in range(1, N + 1) if N % d == 0]
        fitting = [d for d in sorted(divisors, reverse=True)
                   if d * per_sample_bytes <= _BLOCK_BUDGET]
        nb = fitting[0] if fitting else 1
        for d in fitting:
            if N // d >= 2:
                nb = d
                break
        grid = (N // nb,)

        block_bytes = nb * C * hw_pad * itemsize

        scale2 = scale.reshape(1, C, 1)
        bias2 = bias.reshape(1, C, 1)

        kern = functools.partial(
            _ln_fused_kernel,
            inv_count=1.0 / float(C * HW),
            hw_valid=(HW if hw_pad != HW else None))

        out = pl.pallas_call(
            kern,
            out_shape=jax.ShapeDtypeStruct((N, C, hw_pad), x.dtype),
            grid_spec=pltpu.PrefetchScalarGridSpec(
                num_scalar_prefetch=0,
                grid=grid,
                in_specs=[
                    pl.BlockSpec((nb, C, hw_pad), lambda i: (i, 0, 0)),
                    pl.BlockSpec((1, C, 1), lambda i: (0, 0, 0)),
                    pl.BlockSpec((1, C, 1), lambda i: (0, 0, 0)),
                ],
                out_specs=pl.BlockSpec((nb, C, hw_pad), lambda i: (i, 0, 0)),
            ),
            compiler_params=pltpu.CompilerParams(
                dimension_semantics=("parallel",),
                vmem_limit_bytes=_vmem_limit(block_bytes),
            ),
        )(x2, scale2, bias2)

        if hw_pad != HW:
            out = out[:, :, :HW]
        return out.reshape(N, C, H, W)

    # ---------------- Path B: tiled two-pass ----------------
    # TODO(synk): extremely large C (C * 128 * itemsize beyond the VMEM budget)
    # would additionally need channel tiling; not implemented here.
    tk = max(_LANE, (_TILE_TARGET // max(C * itemsize, 1)) // _LANE * _LANE)
    tk = min(tk, hw_pad_lane)
    hw_pad = ((HW + tk - 1) // tk) * tk
    num_t = hw_pad // tk

    x2 = x.reshape(N, C, HW)
    if hw_pad != HW:
        x2 = jnp.pad(x2, ((0, 0), (0, 0), (0, hw_pad - HW)))

    block_bytes = C * tk * itemsize
    vmem_limit = _vmem_limit(block_bytes)

    # Pass 1: per-sample sum and sum-of-squares (zeros in the padded tail
    # contribute nothing, so no mask is needed).
    s1, s2 = pl.pallas_call(
        _stats_kernel,
        out_shape=(jax.ShapeDtypeStruct((N, 1, _LANE), jnp.float32),
                   jax.ShapeDtypeStruct((N, 1, _LANE), jnp.float32)),
        grid_spec=pltpu.PrefetchScalarGridSpec(
            num_scalar_prefetch=0,
            grid=(N, num_t),
            in_specs=[pl.BlockSpec((1, C, tk), lambda n, t: (n, 0, t))],
            out_specs=[pl.BlockSpec((1, 1, _LANE), lambda n, t: (n, 0, 0)),
                       pl.BlockSpec((1, 1, _LANE), lambda n, t: (n, 0, 0))],
        ),
        compiler_params=pltpu.CompilerParams(
            dimension_semantics=("parallel", "arbitrary"),
            vmem_limit_bytes=vmem_limit,
        ),
    )(x2)

    cnt = float(C * HW)
    sum1 = s1[:, 0, 0]
    sum2 = s2[:, 0, 0]
    mean = sum1 / cnt
    var = jnp.maximum(sum2 / cnt - mean * mean, 0.0)   # biased variance
    inv = jax.lax.rsqrt(var + _EPS)                    # (N,)

    scale_c = scale.reshape(C).astype(jnp.float32)
    bias_c = bias.reshape(C).astype(jnp.float32)
    sp = inv[:, None] * scale_c[None, :]               # (N, C)
    bp = bias_c[None, :] - mean[:, None] * sp          # (N, C)
    sp = sp[:, :, None]                                # (N, C, 1)
    bp = bp[:, :, None]

    # Pass 2: single FMA sweep, fully parallel 2-D grid.
    out = pl.pallas_call(
        _apply_kernel,
        out_shape=jax.ShapeDtypeStruct((N, C, hw_pad), x.dtype),
        grid_spec=pltpu.PrefetchScalarGridSpec(
            num_scalar_prefetch=0,
            grid=(N, num_t),
            in_specs=[
                pl.BlockSpec((1, C, tk), lambda n, t: (n, 0, t)),
                pl.BlockSpec((1, C, 1), lambda n, t: (n, 0, 0)),
                pl.BlockSpec((1, C, 1), lambda n, t: (n, 0, 0)),
            ],
            out_specs=pl.BlockSpec((1, C, tk), lambda n, t: (n, 0, t)),
        ),
        compiler_params=pltpu.CompilerParams(
            dimension_semantics=("parallel", "parallel"),
            vmem_limit_bytes=vmem_limit,
        ),
    )(x2, sp, bp)

    if hw_pad != HW:
        out = out[:, :, :HW]
    return out.reshape(N, C, H, W)


def _reference(x, scale, bias):
    # Pure-JAX reference mirroring nn.LayerNorm((C,H,W), elementwise_affine=False)
    xf = x.astype(jnp.float32)
    mean = jnp.mean(xf, axis=(1, 2, 3), keepdims=True)
    var = jnp.mean((xf - mean) ** 2, axis=(1, 2, 3), keepdims=True)
    y = (xf - mean) * jax.lax.rsqrt(var + _EPS)
    return (y * scale + bias).astype(x.dtype)


if __name__ == "__main__":
    key = jax.random.PRNGKey(0)
    N, C, H, W = 2, 4, 16, 16
    kx, ks, kb = jax.random.split(key, 3)

    x = jax.random.normal(kx, (N, C, H, W), dtype=jnp.float32)

    # Module __init__ defaults: bias=0, scale=1 (zero_init=False).
    scale = jnp.ones((1, C, 1, 1), dtype=jnp.float32)
    bias = jnp.zeros((1, C, 1, 1), dtype=jnp.float32)

    out = jax.block_until_ready(layer_norm_affine_2d(x, scale, bias))
    ref = _reference(x, scale, bias)
    assert out.shape == (N, C, H, W)
    assert jnp.allclose(out, ref, atol=1e-5, rtol=1e-5)

    # Non-trivial affine params to exercise the fused s'/b' math,
    # plus the tiled two-pass fallback path.
    scale_r = jax.random.normal(ks, (1, C, 1, 1), dtype=jnp.float32)
    bias_r = jax.random.normal(kb, (1, C, 1, 1), dtype=jnp.float32)

    out1 = jax.block_until_ready(layer_norm_affine_2d(x, scale_r, bias_r))
    ref1 = _reference(x, scale_r, bias_r)
    assert jnp.allclose(out1, ref1, atol=1e-5, rtol=1e-5)

    out2 = jax.block_until_ready(
        layer_norm_affine_2d(x, scale_r, bias_r, force_two_pass=True))
    assert jnp.allclose(out2, ref1, atol=1e-4, rtol=1e-4)

    print("KERNEL_OK")
</pallas_src>

<mosaic_0001>
module attributes {stable_mosaic.version = 11 : i64} {
  func.func @_ln_fused_kernel(%arg0: i32, %arg1: memref<1x4x256xf32, #tpu.memory_space<vmem>>, %arg2: memref<1x4x1xf32, #tpu.memory_space<vmem>>, %arg3: memref<1x4x1xf32, #tpu.memory_space<vmem>>, %arg4: memref<1x4x256xf32, #tpu.memory_space<vmem>>) attributes {dimension_semantics = [#tpu.dimension_semantics<parallel>], iteration_bounds = array<i64: 2>, scalar_prefetch = 0 : i64, scratch_operands = 0 : i64, tpu.core_type = #tpu.core_type<tc>, window_params = [{transform_indices = @transform_0, window_bounds = array<i64: 1, 4, 256>}, {pipeline_mode = #tpu.pipeline_mode<synchronous>, transform_indices = @transform_1, window_bounds = array<i64: 1, 4, 1>}, {pipeline_mode = #tpu.pipeline_mode<synchronous>, transform_indices = @transform_2, window_bounds = array<i64: 1, 4, 1>}, {transform_indices = @transform_3, window_bounds = array<i64: 1, 4, 256>}]} {
    %c0 = arith.constant 0 : index
    %c0_0 = arith.constant 0 : index
    %c0_1 = arith.constant 0 : index
    %0 = vector.load %arg1[%c0, %c0_0, %c0_1] : memref<1x4x256xf32, #tpu.memory_space<vmem>>, vector<1x4x256xf32>
    %cst = arith.constant dense<0.000000e+00> : vector<1xf32>
    %1 = vector.multi_reduction <add>, %0, %cst [1, 2] : vector<1x4x256xf32> to vector<1xf32>
    %2 = vector.shape_cast %1 : vector<1xf32> to vector<1x1x1xf32>
    %cst_2 = arith.constant 9.765625E-4 : f32
    %3 = vector.broadcast %cst_2 : f32 to vector<1x1x1xf32>
    %4 = arith.mulf %2, %3 : vector<1x1x1xf32>
    %5 = vector.broadcast %4 : vector<1x1x1xf32> to vector<1x4x256xf32>
    %6 = arith.subf %0, %5 : vector<1x4x256xf32>
    %7 = arith.mulf %6, %6 : vector<1x4x256xf32>
    %cst_3 = arith.constant dense<0.000000e+00> : vector<1xf32>
    %8 = vector.multi_reduction <add>, %7, %cst_3 [1, 2] : vector<1x4x256xf32> to vector<1xf32>
    %9 = vector.shape_cast %8 : vector<1xf32> to vector<1x1x1xf32>
    %cst_4 = arith.constant 9.765625E-4 : f32
    %10 = vector.broadcast %cst_4 : f32 to vector<1x1x1xf32>
    %11 = arith.mulf %9, %10 : vector<1x1x1xf32>
    %cst_5 = arith.constant 9.99999974E-6 : f32
    %12 = vector.broadcast %cst_5 : f32 to vector<1x1x1xf32>
    %13 = arith.addf %11, %12 : vector<1x1x1xf32>
    %14 = math.rsqrt %13 : vector<1x1x1xf32>
    %c0_6 = arith.constant 0 : index
    %c0_7 = arith.constant 0 : index
    %c0_8 = arith.constant 0 : index
    %15 = vector.load %arg2[%c0_6, %c0_7, %c0_8] : memref<1x4x1xf32, #tpu.memory_space<vmem>>, vector<1x4x1xf32>
    %16 = vector.broadcast %14 : vector<1x1x1xf32> to vector<1x4x1xf32>
    %17 = arith.mulf %16, %15 : vector<1x4x1xf32>
    %c0_9 = arith.constant 0 : index
    %c0_10 = arith.constant 0 : index
    %c0_11 = arith.constant 0 : index
    %18 = vector.load %arg3[%c0_9, %c0_10, %c0_11] : memref<1x4x1xf32, #tpu.memory_space<vmem>>, vector<1x4x1xf32>
    %19 = vector.broadcast %17 : vector<1x4x1xf32> to vector<1x4x256xf32>
    %20 = arith.mulf %6, %19 : vector<1x4x256xf32>
    %21 = vector.broadcast %18 : vector<1x4x1xf32> to vector<1x4x256xf32>
    %22 = arith.addf %20, %21 : vector<1x4x256xf32>
    %c0_12 = arith.constant 0 : index
    %c0_13 = arith.constant 0 : index
    %c0_14 = arith.constant 0 : index
    %23 = vector.load %arg4[%c0_12, %c0_13, %c0_14] : memref<1x4x256xf32, #tpu.memory_space<vmem>>, vector<1x4x256xf32>
    tpu.vector_store %arg4[%c0_12, %c0_13, %c0_14], %22 {strides = array<i32>} : memref<1x4x256xf32, #tpu.memory_space<vmem>>, vector<1x4x256xf32>,
    return
  }
  func.func @transform_0(%arg0: i32) -> (i32, i32, i32) {
    %c0_i32 = arith.constant 0 : i32
    %c0_i32_0 = arith.constant 0 : i32
    %c0_i32_1 = arith.constant 0 : i32
    return %arg0, %c0_i32, %c0_i32_0 : i32, i32, i32
  }
  func.func @transform_1(%arg0: i32) -> (i32, i32, i32) {
    %c0_i32 = arith.constant 0 : i32
    %c0_i32_0 = arith.constant 0 : i32
    %c0_i32_1 = arith.constant 0 : i32
    %c0_i32_2 = arith.constant 0 : i32
    return %c0_i32, %c0_i32_0, %c0_i32_1 : i32, i32, i32
  }
  func.func @transform_2(%arg0: i32) -> (i32, i32, i32) {
    %c0_i32 = arith.constant 0 : i32
    %c0_i32_0 = arith.constant 0 : i32
    %c0_i32_1 = arith.constant 0 : i32
    %c0_i32_2 = arith.constant 0 : i32
    return %c0_i32, %c0_i32_0, %c0_i32_1 : i32, i32, i32
  }
  func.func @transform_3(%arg0: i32) -> (i32, i32, i32) {
    %c0_i32 = arith.constant 0 : i32
    %c0_i32_0 = arith.constant 0 : i32
    %c0_i32_1 = arith.constant 0 : i32
    return %arg0, %c0_i32, %c0_i32_0 : i32, i32, i32
  }
}

</mosaic_0001>

<bundles_post_ra>
// kernel: tpu_custom_call.1
= control target key start
LH: loop header
LB: loop body
LE: loop exit
PB: predicated region body
PF: predicated region fallthrough
CT: control target
= control target key end

     0   :  { %8 = vsyncpa [#allocation3], 0  ;;  %s680_s0 = inlined_call_operand.hbm [shape: f32[2,4,256], index: 0, kind: input, shape index: {}]   ;;  %s681_s1 = inlined_call_operand.vmem [shape: f32[1,4,1], index: 1, kind: input, shape index: {}]   ;;  %s682_s2 = inlined_call_operand.vmem [shape: f32[1,4,1], index: 2, kind: input, shape index: {}]   ;;  %s683_s3 = inlined_call_operand.hbm [shape: f32[2,4,256], index: 3, kind: output, shape index: {}]  }
   0x1   :  { %10 = vsyncpa [#allocation3 + $0x1], 0 }
   0x2   :  { %11 = vsyncpa [#allocation4], 0 }
   0x3   :  { %13 = vsyncpa [#allocation4 + $0x1], 0  ;;  %s539_s12 = smov 0   ;;  %s541_s13 = smov 0  }
   0x4   :  { %s543_s14 = smov 0   ;;  %s545_s15 = smov 0  }
   0x5 LB: > { %s560_s16 = sadd.s32 4294967295, %s515_s15   ;;  %s351_s17 = sadd.s32 4294967294, %s515_s15   ;;  %s515_s15 = sphi %s545_s15, %s693_s15   ;;  %s511_s14 = sphi %s543_s14, %s692_s14   ;;  %s507_s13 = sphi %s541_s13, %s691_s13   ;;  %s503_s12 = sphi %s539_s12, %s690_s12  }
   0x6   : > { %s564_s18 = sadd.s32 1, %s515_s15   ;;  %s26_s19 = sadd.s32 1, %s511_s14 }
   0x7   : > { %s23_s20 = ssub.s32 %s515_s15, %s564_s18  ;;  %p33_p0 = scmp.ne.s32.totalorder %s511_s14, %s507_s13 }
   0x8   : > { %p24_p1 = scmp.eq.s32.totalorder %s23_s20, 0  ;;  %p34_p2 = scmp.eq.s32.totalorder %s515_s15, 0 }
   0x9   : > { %p39_p3 = scmp.ne.s32.totalorder %s507_s13, %s503_s12  ;;  %p40_p4 = scmp.eq.s32.totalorder %s560_s16, 0 }
   0xa   : > { %s576_s21 = scalar_select %p24_p1, %s511_s14, %s26_s19  }
   0xb   : > { %p578_p5 = por %p34_p2, %p33_p0  ;;  %p582_p6 = por %p40_p4, %p39_p3 }
   0xc   : > { %p105_p7 = scmp.eq.s32.totalorder %s560_s16, 1  ;;  %p111_p8 = scmp.eq.s32.totalorder %s351_s17, 1 }
   0xd   : > { %p379_p10 = scmp.lt.s32.totalorder %s515_s15, 2  ;;  %s137_s26 = sand.u32 1, %s511_s14  }
   0xe   : > { %p589_p11 = por %p105_p7, %p33_p0  ;;  %p593_p12 = por %p111_p8, %p39_p3 }
   0xf   : > { %s365_s27 = sshll.u32 %s515_s15, 3  ;;  %s354_s28 = sshll.u32 %s137_s26, 3 }
  0x10   : > { %s146_s4 = scalar_lea.hbm %s680_s0, %s365_s27  ;;  %s141_s6 = scalar_lea.vmem [#allocation2], %s354_s28 }
  0x11   : > { %s148_s5 = sshll.u32 %s146_s4, 4  ;;  %s150_s7 = sshll.u32 %s141_s6, 4  ;;  %s149_s5 = int_to_ptr.hbm [resolvable:$true] %s148_s5  ;;  %s151_s7 = int_to_ptr.vmem [resolvable:$true] %s150_s7 }
  0x12   : > { %p604_p13 = pnand %p379_p10, %p578_p5  ;;  %p357_p0 = scmp.ge.s32.totalorder %s515_s15, 1 }
  0x13   : > { %p155_p1 = scmp.lt.s32.totalorder %s515_s15, 3  ;;  %s138_s9 = scalar_lea.sflag [#allocation3], %s137_s26 }
  0x14   : > { %s419_s10 = sshra.s32 %s149_s5, 4  ;;  %p423_p3 = pneg %p604_p13  ;;  %s420_s10 = int_to_ptr.hbm [resolvable:$true] %s419_s10 }
  0x15   : > { %s421_s11 = scalar_lea.hbm %s420_s10, 8  ;;  %s426_s20 = scalar_lea.hbm %s680_s0, 16 }
  0x16   : > { %p422_p2 = scmp.ne.s32.totalorder %s420_s10, %s421_s11  ;;  %p427_p5 = scmp.lt.s32.totalorder %s420_s10, %s680_s0 }
  0x17   : > { %p428_p8 = scmp.lt.s32.totalorder %s426_s20, %s421_s11 }
  0x18   : > { %p424_p4 = pnand %p423_p3, %p422_p2 }
  0x19   : > { %p429_p10 = por %p428_p8, %p427_p5 }
  0x1a   : > { %p425_p7 = pneg %p424_p4 }
  0x1c   : > { %p430_p9 = pnand %p429_p10, %p425_p7 }
  0x1e   : > { %433 = shalt.err (!%p430_p9)
}
  0x1f   : > { %374 = dma.hbm_to_vmem [thread:$0]  (!%p604_p13), %s149_s5, 128, %s151_s7, %s138_s9  }
  0x20   : > { %p156_p2 = pnand %p357_p0, %p155_p1 }
  0x21   : > { %s625_s26 = sand.u32 (!%p156_p2), 1, %s507_s13  }
  0x22   : > { %159 = sbr.rel (%p156_p2) target bundleno = 479 (0x1df), region = 32  ;;  %s358_s28 = sshll.u32 (!%p156_p2), %s625_s26, 3 }
  0x23   : > { %s162_s29 = scalar_lea.sflag (!%p156_p2), [#allocation3], %s625_s26  ;;  %s165_s30 = scalar_lea.vmem (!%p156_p2), [#allocation2], %s358_s28 }
  0x27   : > { %494 = dma.done.wait (%p582_p6), %s162_s29, 128  }
  0x28   : > { %496 = vsyncadd (%p582_p6), %s162_s29, 4294967168  ;;  %v189_v0 = vld [vmem:[%s165_s30] sm:$0xff]  ;;  %vm196_vm0 = vcmask 1043456   ;;  %v517_v21 = vmov 0   ;;  %v240_v37 = vld [vmem:[%s681_s1] sm:$0xf] }
  0x29   : > { %191 = vst [vmem:[#allocation1] ss:$2 sm:$0xff] %v189_v0  ;;  %415 = vset.pattern.permute.xlu1 %v517_v21  ;;  %416 = vset.pattern.permute.xlu0 %v517_v21  ;;  %v242_v40 = vld [vmem:[%s682_s2] sm:$0xf]  ;;  %v518_v41 = vmov 839922192  }
  0x2a   : > { %v248_v42 = vunpack.c.l.s4 %v518_v41  ;;  %s366_s7 = sshll.u32 %s560_s16, 3  ;;  %s188_s11 = scalar_lea.vmem [#allocation5], %s358_s28 }
  0x2b   : > { %s276_s10 = scalar_lea.hbm %s683_s3, %s366_s7  ;;  %s278_s17 = sshll.u32 %s188_s11, 4  ;;  %s279_s17 = int_to_ptr.vmem [resolvable:$true] %s278_s17 }
  0x2c   : > { %v249_v44 = vunpack.c.0.s8 %v248_v42  ;;  %s280_s19 = sshll.u32 %s276_s10, 4  ;;  %s265_s20 = scalar_lea.sflag [#allocation4], %s625_s26  ;;  %s281_s19 = int_to_ptr.hbm [resolvable:$true] %s280_s19 }
  0x2d   : > { %s463_s22 = sshra.s32 %s281_s19, 4  ;;  %s469_s28 = scalar_lea.hbm %s683_s3, 16  ;;  %s464_s22 = int_to_ptr.hbm [resolvable:$true] %s463_s22 }
  0x2e   : > { %s465_s16 = scalar_lea.hbm %s464_s22, 8  ;;  %p470_p0 = scmp.lt.s32.totalorder %s464_s22, %s683_s3 }
  0x2f   : > { %p466_p6 = scmp.ne.s32.totalorder %s464_s22, %s465_s16  ;;  %p471_p1 = scmp.lt.s32.totalorder %s469_s28, %s465_s16 }
  0x30   : > { %v192_v1 = vld.sshfl [vmem:[#allocation1] sm:$0xff pattern:$0x75316420]  ;;  %v193_v2 = vld.sshfl [vmem:[#allocation1 + $0x8] sm:$0xff pattern:$0x75316420] }
  0x31   : > { %v197_v3 = vsel %vm196_vm0, %v192_v1, 0.0  ;;  %v198_v4 = vsel %vm196_vm0, %v193_v2, 0.0  ;;  %p467_p9 = pnand %p466_p6, %p589_p11  ;;  %p472_p3 = por %p471_p1, %p470_p0 }
  0x32   : > { %v199_v5 = vadd.f32 %v198_v4, %v197_v3 }
  0x33   : > { %p468_p13 = pneg %p467_p9 }
  0x34   : > { %200 = vadd.xlane.f32.xlu0 %v199_v5 }
  0x35   : > { %p473_p4 = pnand %p472_p3, %p468_p13 }
  0xa7   : > { %v201_v6 = vpop.xlane.xlu0 %200 }
  0xa8   : > { %v202_v7 = vrot.slane %v201_v6, 4 }
  0xaa   : > { %v203_v8 = vadd.f32 %v202_v7, %v201_v6 }
  0xac   : > { %v204_v9 = vrot.slane %v203_v8, 2 }
  0xae   : > { %v205_v10 = vadd.f32 %v204_v9, %v203_v8 }
  0xb0   : > { %v206_v11 = vrot.slane %v205_v10, 1 }
  0xb2   : > { %v207_v12 = vadd.f32 %v206_v11, %v205_v10 }
  0xb4   : > { %v208_v13 = vmul.f32 0.0009765625, %v207_v12 }
  0xb6   : > { %v209_v14 = vsub.f32 %v189_v0, %v208_v13 }
  0xb8   : > { %v210_v15 = vmul.f32 %v209_v14, %v209_v14 }
  0xba   : > { %212 = vst [vmem:[#allocation1] ss:$2 sm:$0xff] %v210_v15 }
  0xc1   : > { %v213_v16 = vld.sshfl [vmem:[#allocation1] sm:$0xff pattern:$0x75316420]  ;;  %v214_v17 = vld.sshfl [vmem:[#allocation1 + $0x8] sm:$0xff pattern:$0x75316420] }
  0xc2   : > { %v217_v18 = vsel %vm196_vm0, %v213_v16, 0.0  ;;  %v218_v19 = vsel %vm196_vm0, %v214_v17, 0.0 }
  0xc3   : > { %v219_v20 = vadd.f32 %v218_v19, %v217_v18 }
  0xc5   : > { %220 = vadd.xlane.f32.xlu0 %v219_v20 }
 0x138   : > { %v221_v22 = vpop.xlane.xlu0 %220 }
 0x139   : > { %v222_v23 = vrot.slane %v221_v22, 4 }
 0x13b   : > { %v223_v24 = vadd.f32 %v222_v23, %v221_v22 }
 0x13d   : > { %v224_v25 = vrot.slane %v223_v24, 2 }
 0x13f   : > { %v225_v26 = vadd.f32 %v224_v25, %v223_v24 }
 0x141   : > { %v226_v27 = vrot.slane %v225_v26, 1 }
 0x143   : > { %v227_v28 = vadd.f32 %v226_v27, %v225_v26 }
 0x145   : > { %v228_v29 = vmul.f32 0.0009765625, %v227_v28 }
 0x147   : > { %v229_v30 = vadd.f32 1e-05, %v228_v29 }
 0x149   : > { %417 = vrsqrt.f32 %v229_v30  ;;  %vm236_vm2 = vweird.f32 %v229_v30 }
 0x14f   : > { %v418_v31 = vpop.eup %417 }
 0x150   : > { %v231_v32 = vmul.f32 %v418_v31, %v229_v30  ;;  %vm237_vm1 = vweird.f32 %v418_v31 }
 0x151   : > { %vm238_vm3 = vmor %vm236_vm2, %vm237_vm1 }
 0x152   : > { %v232_v33 = vmul.f32 %v418_v31, %v231_v32 }
 0x154   : > { %v233_v34 = vmul.f32 0.5, %v232_v33 }
 0x156   : > { %v234_v35 = vsub.f32 1.5, %v233_v34 }
 0x158   : > { %v235_v36 = vmul.f32 %v418_v31, %v234_v35 }
 0x15a   : > { %v239_v38 = vsel %vm238_vm3, %v418_v31, %v235_v36 }
 0x15b   : > { %v241_v39 = vmul.f32 %v240_v37, %v239_v38 }
 0x15d   : > { %245 = vperm.xlu1 %415, %v241_v39  }
 0x165   : > { %255 = vperm.xlu1 %415, %v242_v40  }
 0x1cf   : > { %v246_v43 = vpop.permute.xlu1 %245 }
 0x1d0   : > { %v250_v45 = vperm.slane %v246_v43, %v249_v44 }
 0x1d2   : > { %v252_v47 = vmul.f32 %v250_v45, %v209_v14 }
 0x1d7   : > { %v256_v46 = vpop.permute.xlu1 %255 }
 0x1d8   : > { %v260_v48 = vperm.slane %v256_v46, %v249_v44 }
 0x1da   : > { %v262_v49 = vadd.f32 %v260_v48, %v252_v47 }
 0x1dc   : > { %263 = vst [vmem:[%s188_s11] sm:$0xff] %v262_v49 }
 0x1dd   : > { %476 = shalt.err (!%p473_p4)
}
 0x1de   : > { %369 = dma.vmem_to_hbm [thread:$0]  (%p589_p11), %s279_s17, 128, %s281_s19, %s265_s20  }
 0x1df PF: > { %s292_s26 = sand.u32 1, %s503_s12   ;;  %p689_p7 = scmp.ge.s32.totalorder %s515_s15, 2 }
 0x1e0   : > { %s293_s4 = scalar_lea.sflag [#allocation4], %s292_s26 }
 0x1e1   : > { %p376_p5 = pnand %p689_p7, %p593_p12 }
 0x1e3   : > { %p377_p8 = pneg %p376_p5 }
 0x1e5   : > { %498 = dma.done.wait (%p377_p8), %s293_s4, 128  }
 0x1e6   : > { %500 = vsyncadd (%p377_p8), %s293_s4, 4294967168  ;;  %p16_p10 = scmp.ge.s32.totalorder %s564_s18, 4   ;;  %s690_s12 = smov %s507_s13 }
 0x1e7   : > { %s691_s13 = smov %s511_s14  ;;  %s692_s14 = smov %s576_s21 }
 0x1e8   : > { %s693_s15 = smov %s564_s18  ;;  %18 = sbr.rel (!%p16_p10) target bundleno = 5 (0x5), region = 77 }
 0x1ed   :  { %299 = vsyncpa [#allocation3], 1 }
 0x1ee   :  { %301 = vsyncpa [#allocation3 + $0x1], 1 }
 0x1ef   :  { %302 = vsyncpa [#allocation4], 1 }
 0x1f0   :  { %304 = vsyncpa [#allocation4 + $0x1], 1 }

</bundles_post_ra>
